<compile_context>
chip_gen: v6e
topology: v6e:2x2x1
jax: 0.10.0
libtpu: 0.0.40
codegen_flags: <defaults>
</compile_context>

<pallas_src>
import jax
import jax.numpy as jnp
from jax.experimental import pallas as pl
from jax.experimental.pallas import tpu as pltpu


_L2_CHUNK = 32  # layer-2 output rows per MXU pass; keeps live f32 intermediates small


def _critic_kernel(xt_ref, w1_ref, w2_ref, w3_ref, b3_ref, o_ref):
    # xt_ref: (inp+1, TB) bf16 -- batch on lanes; last row is the ones-row
    # w1_ref: (65, inp+1) bf16 -- rows 0:64 = [W1 | b1], row 64 = [0..0 | 1]
    # w2_ref: (128, 65)  bf16 -- [W2 | b2]
    # w3_ref: (128, 1)   f32
    # b3_ref: (1, 1)     f32
    # o_ref : (1, TB)    f32  -- lane-dense output row
    h1 = jnp.dot(w1_ref[...], xt_ref[...],
                 preferred_element_type=jnp.float32)            # (65, TB) f32
    # ReLU; the carrier row 64 stays exactly 1.0 so it delivers b2 in matmul 2.
    h1b = jnp.maximum(h1, 0.0).astype(jnp.bfloat16)             # (65, TB) bf16

    # Layer 2 + Linear(128,1), chunked over output rows. The N=1 layer is a
    # VPU multiply + sublane (XLU) reduce, never an N=1 MXU pass.
    n_rows = w2_ref.shape[0]
    acc = jnp.zeros((1, xt_ref.shape[1]), jnp.float32)          # (1, TB)
    for r0 in range(0, n_rows, _L2_CHUNK):
        rows = pl.ds(r0, _L2_CHUNK)                             # static slice
        h2c = jnp.dot(w2_ref[rows, :], h1b,
                      preferred_element_type=jnp.float32)       # (32, TB) f32
        acc = acc + jnp.sum(jnp.maximum(h2c, 0.0) * w3_ref[rows, :],
                            axis=0, keepdims=True)
    o_ref[...] = acc + b3_ref[...]


def _xavier_uniform(key, shape):
    # torch.nn.init.xavier_uniform_: U(-a, a), a = sqrt(6 / (fan_in + fan_out))
    fan_out, fan_in = shape
    a = jnp.sqrt(6.0 / (fan_in + fan_out))
    return jax.random.uniform(key, shape, jnp.float32, -a, a)


def init_critic_params(key, inp_size):
    """Torch-layout, all-f32 parameters: weights are (out_features, in_features)."""
    k1, k2, k3 = jax.random.split(key, 3)
    w1 = _xavier_uniform(k1, (64, inp_size))
    w2 = _xavier_uniform(k2, (128, 64))
    w3 = _xavier_uniform(k3, (1, 128))
    b1 = jnp.zeros((64,), jnp.float32)     # torch module uses constant_(bias, 0.0)
    b2 = jnp.zeros((128,), jnp.float32)
    b3 = jnp.zeros((1,), jnp.float32)
    return (w1, b1, w2, b2, w3, b3)


def pack_params_for_kernel(params, matmul_dtype=jnp.bfloat16):
    """Fuse biases into the matmul weights (augmented-K / ones-row-carrier)."""
    w1, b1, w2, b2, w3, b3 = params
    inp = w1.shape[1]
    top = jnp.concatenate([w1, b1[:, None]], axis=1)               # (64, inp+1)
    carrier = jnp.zeros((1, inp + 1), jnp.float32).at[0, inp].set(1.0)
    w1_full = jnp.concatenate([top, carrier], axis=0).astype(matmul_dtype)  # (65, inp+1)
    w2_aug = jnp.concatenate([w2, b2[:, None]], axis=1).astype(matmul_dtype)  # (128, 65)
    w3_col = w3.reshape(128, 1).astype(jnp.float32)
    b3_sc = b3.reshape(1, 1).astype(jnp.float32)
    return (w1_full, w2_aug, w3_col, b3_sc)


def _choose_block_b(batch):
    # Large blocks amortize the ~0.35us per-grid-step overhead; cap so the
    # parallel batch axis still yields >=2 grid steps (v7x has 2 TensorCores).
    half = 128 * pl.cdiv(pl.cdiv(batch, 2), 128)   # ~B/2 rounded up to 128
    return int(max(128, min(2048, half)))


def critic_forward_batched(x_batch, params, *, block_b=None):
    """x_batch: (B, inp_size) f32 -> (B, 1) f32, via the Pallas kernel."""
    assert x_batch.ndim == 2
    w1_full, w2_aug, w3_col, b3_sc = pack_params_for_kernel(params)
    B, inp = x_batch.shape
    assert w1_full.shape[1] == inp + 1

    if block_b is None:
        block_b = _choose_block_b(B)
    assert block_b % 128 == 0, "block_b must be a multiple of 128 (lane tiling)"
    # NOTE: block_b > ~8K would need pltpu.CompilerParams(vmem_limit_bytes=...);
    # the auto-choice caps at 2048 which stays far under the scoped VMEM default.
    n_blocks = pl.cdiv(B, block_b)
    b_pad = n_blocks * block_b

    # Single bf16 layout pass: (B, inp) f32 -> (inp+1, b_pad) bf16 with the
    # augmented ones-row (this is what folds b1 into matmul 1).  Padded batch
    # columns are all-zero (ones-row included), so they just produce b3 garbage
    # that is sliced off below -- nothing may read out[:, B:].
    # TODO(synk): produce x in (inp, B) bf16 layout upstream to drop this pass.
    xb = x_batch.astype(jnp.bfloat16).T                          # (inp, B) bf16
    xt = jnp.concatenate([xb, jnp.ones((1, B), jnp.bfloat16)], axis=0)
    if b_pad != B:
        xt = jnp.pad(xt, ((0, 0), (0, b_pad - B)))

    const = lambda i: (0, 0)   # weights: VMEM-resident, never re-DMA'd
    out = pl.pallas_call(
        _critic_kernel,
        out_shape=jax.ShapeDtypeStruct((1, b_pad), jnp.float32),
        grid=(n_blocks,),
        in_specs=[
            pl.BlockSpec((inp + 1, block_b), lambda i: (0, i)),  # x tile per step
            pl.BlockSpec(w1_full.shape, const),
            pl.BlockSpec(w2_aug.shape, const),
            pl.BlockSpec(w3_col.shape, const),
            pl.BlockSpec(b3_sc.shape, const),
        ],
        out_specs=pl.BlockSpec((1, block_b), lambda i: (0, i)),
        compiler_params=pltpu.CompilerParams(
            dimension_semantics=("parallel",)),
    )(xt, w1_full, w2_aug, w3_col, b3_sc)
    return out[0, :B].reshape(B, 1)


def critic_forward(x, params, *, use_pallas=False):
    """Original torch-module semantics: X of shape (inp_size,) -> (1,).

    For a single tiny sample the plain-JAX dense path is faster than a Pallas
    launch (transpose + pad + launch are pure fixed cost), so that is the
    default; set use_pallas=True to route through the kernel.
    """
    assert x.ndim == 1
    if use_pallas:
        return critic_forward_batched(x[None, :], params).reshape(1)
    return critic_ref_f32(x[None, :], params).reshape(1)


def critic_ref_f32(x_batch, params):
    """All-float32 reference (torch-equivalent math)."""
    w1, b1, w2, b2, w3, b3 = params
    h1 = jnp.maximum(x_batch @ w1.T + b1, 0.0)
    h2 = jnp.maximum(h1 @ w2.T + b2, 0.0)
    return h2 @ w3.T + b3                                        # (B, 1)


def critic_ref_bf16(x_batch, params):
    """Reference matching the kernel numerics: bf16 matmul inputs, f32 accumulate."""
    w1, b1, w2, b2, w3, b3 = params
    bf = jnp.bfloat16
    h1 = jnp.dot(x_batch.astype(bf), w1.astype(bf).T,
                 preferred_element_type=jnp.float32)
    h1 = jnp.maximum(h1 + b1.astype(bf).astype(jnp.float32), 0.0)
    h2 = jnp.dot(h1.astype(bf), w2.astype(bf).T,
                 preferred_element_type=jnp.float32)
    h2 = jnp.maximum(h2 + b2.astype(bf).astype(jnp.float32), 0.0)
    return jnp.dot(h2, w3.astype(jnp.float32).T) + b3            # (B, 1)


if __name__ == "__main__":
    inp_size = 8
    key = jax.random.PRNGKey(0)
    k_param, k_x1, k_xb, k_xl = jax.random.split(key, 4)
    params = init_critic_params(k_param, inp_size)

    # 1) Batched Pallas path (the performance path), small shapes.
    batch = 16
    x_batch = jax.random.normal(k_xb, (batch, inp_size), jnp.float32)
    out_batch = jax.block_until_ready(critic_forward_batched(x_batch, params))
    assert out_batch.shape == (batch, 1)
    ref_bf16 = critic_ref_bf16(x_batch, params)
    ref_f32 = critic_ref_f32(x_batch, params)
    assert jnp.allclose(out_batch, ref_bf16, atol=2e-3, rtol=2e-3), (out_batch, ref_bf16)
    # bf16 matmul inputs are an intentional numerics change -> loose f32 check.
    assert jnp.allclose(out_batch, ref_f32, atol=1e-1, rtol=1e-1), (out_batch, ref_f32)

    # 2) Multi-block grid + batch-padding exercise (2 grid steps, 56 padded cols).
    batch2 = 200
    x2 = jax.random.normal(k_xl, (batch2, inp_size), jnp.float32)
    out2 = jax.block_until_ready(critic_forward_batched(x2, params))
    assert out2.shape == (batch2, 1)
    assert jnp.allclose(out2, critic_ref_bf16(x2, params), atol=2e-3, rtol=2e-3)

    # 3) Original torch-module semantics: X of shape (inp_size,) -> (1,).
    x_single = jax.random.normal(k_x1, (inp_size,), jnp.float32)
    out_single = jax.block_until_ready(
        critic_forward(x_single, params, use_pallas=True))
    assert out_single.shape == (1,)
    assert jnp.allclose(out_single,
                        critic_ref_bf16(x_single[None, :], params).reshape(1),
                        atol=2e-3, rtol=2e-3)

    print("KERNEL_OK")
</pallas_src>

<mosaic_0001>
module attributes {stable_mosaic.version = 11 : i64} {
  func.func @_critic_kernel(%arg0: i32, %arg1: memref<9x128xbf16, #tpu.memory_space<vmem>>, %arg2: memref<65x9xbf16, #tpu.memory_space<vmem>>, %arg3: memref<128x65xbf16, #tpu.memory_space<vmem>>, %arg4: memref<128x1xf32, #tpu.memory_space<vmem>>, %arg5: memref<1x1xf32, #tpu.memory_space<vmem>>, %arg6: memref<1x128xf32, #tpu.memory_space<vmem>>) attributes {dimension_semantics = [#tpu.dimension_semantics<parallel>], iteration_bounds = array<i64: 1>, scalar_prefetch = 0 : i64, scratch_operands = 0 : i64, tpu.core_type = #tpu.core_type<tc>, window_params = [{transform_indices = @transform_0, window_bounds = array<i64: 9, 128>}, {pipeline_mode = #tpu.pipeline_mode<synchronous>, transform_indices = @transform_1, window_bounds = array<i64: 65, 9>}, {pipeline_mode = #tpu.pipeline_mode<synchronous>, transform_indices = @transform_2, window_bounds = array<i64: 128, 65>}, {pipeline_mode = #tpu.pipeline_mode<synchronous>, transform_indices = @transform_3, window_bounds = array<i64: 128, 1>}, {pipeline_mode = #tpu.pipeline_mode<synchronous>, transform_indices = @transform_4, window_bounds = array<i64: 1, 1>}, {transform_indices = @transform_5, window_bounds = array<i64: 1, 128>}]} {
    %c0 = arith.constant 0 : index
    %c0_0 = arith.constant 0 : index
    %0 = vector.load %arg2[%c0, %c0_0] : memref<65x9xbf16, #tpu.memory_space<vmem>>, vector<65x9xbf16>
    %c0_1 = arith.constant 0 : index
    %c0_2 = arith.constant 0 : index
    %1 = vector.load %arg1[%c0_1, %c0_2] : memref<9x128xbf16, #tpu.memory_space<vmem>>, vector<9x128xbf16>
    %cst = arith.constant dense<0.000000e+00> : vector<65x128xf32>
    %2 = tpu.matmul %0, %1, %cst {dimension_numbers = #tpu.dot_dimension_numbers<[1], [0], [0], [1], [0, 0, 1, 1], [], []>} : vector<65x9xbf16>, vector<9x128xbf16>, vector<65x128xf32> -> vector<65x128xf32>
    %cst_3 = arith.constant 0.000000e+00 : f32
    %3 = vector.broadcast %cst_3 : f32 to vector<65x128xf32>
    %4 = arith.maximumf %2, %3 : vector<65x128xf32>
    %5 = arith.truncf %4 : vector<65x128xf32> to vector<65x128xbf16>
    %cst_4 = arith.constant 0.000000e+00 : f32
    %6 = vector.broadcast %cst_4 : f32 to vector<1x128xf32>
    %c0_5 = arith.constant 0 : index
    %c0_6 = arith.constant 0 : index
    %7 = vector.load %arg3[%c0_5, %c0_6] : memref<128x65xbf16, #tpu.memory_space<vmem>>, vector<32x65xbf16>
    %cst_7 = arith.constant dense<0.000000e+00> : vector<32x128xf32>
    %8 = tpu.matmul %7, %5, %cst_7 {dimension_numbers = #tpu.dot_dimension_numbers<[1], [0], [0], [1], [0, 0, 1, 1], [], []>} : vector<32x65xbf16>, vector<65x128xbf16>, vector<32x128xf32> -> vector<32x128xf32>
    %cst_8 = arith.constant 0.000000e+00 : f32
    %9 = vector.broadcast %cst_8 : f32 to vector<32x128xf32>
    %10 = arith.maximumf %8, %9 : vector<32x128xf32>
    %c0_9 = arith.constant 0 : index
    %c0_10 = arith.constant 0 : index
    %11 = vector.load %arg4[%c0_9, %c0_10] : memref<128x1xf32, #tpu.memory_space<vmem>>, vector<32x1xf32>
    %12 = vector.broadcast %11 : vector<32x1xf32> to vector<32x128xf32>
    %13 = arith.mulf %10, %12 : vector<32x128xf32>
    %cst_11 = arith.constant dense<0.000000e+00> : vector<128xf32>
    %14 = vector.multi_reduction <add>, %13, %cst_11 [0] : vector<32x128xf32> to vector<128xf32>
    %15 = vector.shape_cast %14 : vector<128xf32> to vector<1x128xf32>
    %16 = arith.addf %6, %15 : vector<1x128xf32>
    %c32 = arith.constant 32 : index
    %c0_12 = arith.constant 0 : index
    %17 = vector.load %arg3[%c32, %c0_12] : memref<128x65xbf16, #tpu.memory_space<vmem>>, vector<32x65xbf16>
    %cst_13 = arith.constant dense<0.000000e+00> : vector<32x128xf32>
    %18 = tpu.matmul %17, %5, %cst_13 {dimension_numbers = #tpu.dot_dimension_numbers<[1], [0], [0], [1], [0, 0, 1, 1], [], []>} : vector<32x65xbf16>, vector<65x128xbf16>, vector<32x128xf32> -> vector<32x128xf32>
    %cst_14 = arith.constant 0.000000e+00 : f32
    %19 = vector.broadcast %cst_14 : f32 to vector<32x128xf32>
    %20 = arith.maximumf %18, %19 : vector<32x128xf32>
    %c32_15 = arith.constant 32 : index
    %c0_16 = arith.constant 0 : index
    %21 = vector.load %arg4[%c32_15, %c0_16] : memref<128x1xf32, #tpu.memory_space<vmem>>, vector<32x1xf32>
    %22 = vector.broadcast %21 : vector<32x1xf32> to vector<32x128xf32>
    %23 = arith.mulf %20, %22 : vector<32x128xf32>
    %cst_17 = arith.constant dense<0.000000e+00> : vector<128xf32>
    %24 = vector.multi_reduction <add>, %23, %cst_17 [0] : vector<32x128xf32> to vector<128xf32>
    %25 = vector.shape_cast %24 : vector<128xf32> to vector<1x128xf32>
    %26 = arith.addf %16, %25 : vector<1x128xf32>
    %c64 = arith.constant 64 : index
    %c0_18 = arith.constant 0 : index
    %27 = vector.load %arg3[%c64, %c0_18] : memref<128x65xbf16, #tpu.memory_space<vmem>>, vector<32x65xbf16>
    %cst_19 = arith.constant dense<0.000000e+00> : vector<32x128xf32>
    %28 = tpu.matmul %27, %5, %cst_19 {dimension_numbers = #tpu.dot_dimension_numbers<[1], [0], [0], [1], [0, 0, 1, 1], [], []>} : vector<32x65xbf16>, vector<65x128xbf16>, vector<32x128xf32> -> vector<32x128xf32>
    %cst_20 = arith.constant 0.000000e+00 : f32
    %29 = vector.broadcast %cst_20 : f32 to vector<32x128xf32>
    %30 = arith.maximumf %28, %29 : vector<32x128xf32>
    %c64_21 = arith.constant 64 : index
    %c0_22 = arith.constant 0 : index
    %31 = vector.load %arg4[%c64_21, %c0_22] : memref<128x1xf32, #tpu.memory_space<vmem>>, vector<32x1xf32>
    %32 = vector.broadcast %31 : vector<32x1xf32> to vector<32x128xf32>
    %33 = arith.mulf %30, %32 : vector<32x128xf32>
    %cst_23 = arith.constant dense<0.000000e+00> : vector<128xf32>
    %34 = vector.multi_reduction <add>, %33, %cst_23 [0] : vector<32x128xf32> to vector<128xf32>
    %35 = vector.shape_cast %34 : vector<128xf32> to vector<1x128xf32>
    %36 = arith.addf %26, %35 : vector<1x128xf32>
    %c96 = arith.constant 96 : index
    %c0_24 = arith.constant 0 : index
    %37 = vector.load %arg3[%c96, %c0_24] : memref<128x65xbf16, #tpu.memory_space<vmem>>, vector<32x65xbf16>
    %cst_25 = arith.constant dense<0.000000e+00> : vector<32x128xf32>
    %38 = tpu.matmul %37, %5, %cst_25 {dimension_numbers = #tpu.dot_dimension_numbers<[1], [0], [0], [1], [0, 0, 1, 1], [], []>} : vector<32x65xbf16>, vector<65x128xbf16>, vector<32x128xf32> -> vector<32x128xf32>
    %cst_26 = arith.constant 0.000000e+00 : f32
    %39 = vector.broadcast %cst_26 : f32 to vector<32x128xf32>
    %40 = arith.maximumf %38, %39 : vector<32x128xf32>
    %c96_27 = arith.constant 96 : index
    %c0_28 = arith.constant 0 : index
    %41 = vector.load %arg4[%c96_27, %c0_28] : memref<128x1xf32, #tpu.memory_space<vmem>>, vector<32x1xf32>
    %42 = vector.broadcast %41 : vector<32x1xf32> to vector<32x128xf32>
    %43 = arith.mulf %40, %42 : vector<32x128xf32>
    %cst_29 = arith.constant dense<0.000000e+00> : vector<128xf32>
    %44 = vector.multi_reduction <add>, %43, %cst_29 [0] : vector<32x128xf32> to vector<128xf32>
    %45 = vector.shape_cast %44 : vector<128xf32> to vector<1x128xf32>
    %46 = arith.addf %36, %45 : vector<1x128xf32>
    %c0_30 = arith.constant 0 : index
    %c0_31 = arith.constant 0 : index
    %47 = vector.load %arg5[%c0_30, %c0_31] : memref<1x1xf32, #tpu.memory_space<vmem>>, vector<1x1xf32>
    %48 = vector.broadcast %47 : vector<1x1xf32> to vector<1x128xf32>
    %49 = arith.addf %46, %48 : vector<1x128xf32>
    %c0_32 = arith.constant 0 : index
    %c0_33 = arith.constant 0 : index
    %50 = vector.load %arg6[%c0_32, %c0_33] : memref<1x128xf32, #tpu.memory_space<vmem>>, vector<1x128xf32>
    tpu.vector_store %arg6[%c0_32, %c0_33], %49 {strides = array<i32>} : memref<1x128xf32, #tpu.memory_space<vmem>>, vector<1x128xf32>,
    return
  }
  func.func @transform_0(%arg0: i32) -> (i32, i32) {
    %c0_i32 = arith.constant 0 : i32
    %c0_i32_0 = arith.constant 0 : i32
    return %c0_i32, %arg0 : i32, i32
  }
  func.func @transform_1(%arg0: i32) -> (i32, i32) {
    %c0_i32 = arith.constant 0 : i32
    %c0_i32_0 = arith.constant 0 : i32
    %c0_i32_1 = arith.constant 0 : i32
    return %c0_i32, %c0_i32_0 : i32, i32
  }
  func.func @transform_2(%arg0: i32) -> (i32, i32) {
    %c0_i32 = arith.constant 0 : i32
    %c0_i32_0 = arith.constant 0 : i32
    %c0_i32_1 = arith.constant 0 : i32
    return %c0_i32, %c0_i32_0 : i32, i32
  }
  func.func @transform_3(%arg0: i32) -> (i32, i32) {
    %c0_i32 = arith.constant 0 : i32
    %c0_i32_0 = arith.constant 0 : i32
    %c0_i32_1 = arith.constant 0 : i32
    return %c0_i32, %c0_i32_0 : i32, i32
  }
  func.func @transform_4(%arg0: i32) -> (i32, i32) {
    %c0_i32 = arith.constant 0 : i32
    %c0_i32_0 = arith.constant 0 : i32
    %c0_i32_1 = arith.constant 0 : i32
    return %c0_i32, %c0_i32_0 : i32, i32
  }
  func.func @transform_5(%arg0: i32) -> (i32, i32) {
    %c0_i32 = arith.constant 0 : i32
    %c0_i32_0 = arith.constant 0 : i32
    return %c0_i32, %arg0 : i32, i32
  }
}

</mosaic_0001>

<bundles_post_ra>
// kernel: tpu_custom_call.1
= control target key start
LH: loop header
LB: loop body
LE: loop exit
PB: predicated region body
PF: predicated region fallthrough
CT: control target
= control target key end

     0   :  { %s975_s0 = inlined_call_operand.vmem [shape: bf16[9,128], index: 0, kind: input, shape index: {}]   ;;  %s976_s1 = inlined_call_operand.vmem [shape: bf16[65,9], index: 1, kind: input, shape index: {}]   ;;  %s977_s2 = inlined_call_operand.vmem [shape: bf16[128,65], index: 2, kind: input, shape index: {}]   ;;  %s978_s3 = inlined_call_operand.vmem [shape: f32[128,1], index: 3, kind: input, shape index: {}]   ;;  %s979_s4 = inlined_call_operand.<no memory space> [shape: f32[1,1], index: 4, kind: input, shape index: {}]   ;;  %s980_s5 = inlined_call_operand.hbm [shape: f32[1,128], index: 5, kind: output, shape index: {}]  }
   0x1   :  { %v10_v0 = vstv %s979_s4 }
   0x2   :  { %11 = vst [vmem:[#allocation2] sm:$0x1] %v10_v0 }
   0x3   :  { %vm79_vm0 = vcmask 1043456   ;;  %v831_v1 = vmov 0.0   ;;  %v795_v2 = vld [vmem:[%s975_s0] sm:$0x1f]   ;;  %vm80_vm1 = vcmask 1044480   ;;  %v832_v3 = vmov 65535  }
   0x4   :  { %710 = vmatprep.subr.bf16.mxu0 %v831_v1  ;;  %v81_v4 = vsel %vm79_vm0, 4294967295, %v832_v3  ;;  %vm833_vm2 = vmmov 0   ;;  %v796_v7 = vld [vmem:[%s976_s1] sm:$0xff]   ;;  %vm63_vm3 = vcmask 72704  }
   0x5   :  { %712 = vmatprep.mubr.msk.bf16.mxu0 %vm833_vm2, %v831_v1  ;;  %v82_v5 = vsel %vm80_vm1, %v81_v4, 0 }
   0x6   :  { %v84_v6 = vand.u32 %v795_v2, %v82_v5 }
   0x8   :  { %711 = vmatpush3.bf16.msra.mxu0 %v84_v6 }
   0xb   :  { %713 = vmatmul.mubr.msk.bf16.vlgmr.msra.gmra.mxu0 %vm63_vm3, %v796_v7 }
   0xc   :  { %716 = vmatprep.mubr.msk.bf16.mxu0 %vm833_vm2, %v831_v1 }
   0xd   :  { %12 = vsyncpa [#allocation4], 0  ;;  %v797_v8 = vld [vmem:[%s976_s1 + $0x8] sm:$0xff]   ;;  %v798_v9 = vld [vmem:[%s976_s1 + $0x10] sm:$0xff]   ;;  %v834_v12 = vmov 0   ;;  %vm186_vm4 = vcmask 531456  }
   0xe   :  { %v799_v10 = vld [vmem:[%s976_s1 + $0x18] sm:$0xff]   ;;  %v800_v11 = vld [vmem:[%s976_s1 + $0x20] ss:$0 sps:$4 sm:$0x11]   ;;  %793 = vset.pattern.permute.xlu0 %v834_v12  ;;  %794 = vset.pattern.permute.xlu1 %v834_v12  ;;  %v253_v17 = vld [vmem:[%s978_s3 + $0x8] sm:$0xff]  ;;  %vm193_vm5 = vcmask 1040384  }
   0xf   :  { %v801_v13 = vld [vmem:[%s977_s2] sm:$0xff]   ;;  %v364_v18 = vld [vmem:[%s978_s3 + $0x28] sm:$0xff]  ;;  %v254_v19 = vld [vmem:[%s978_s3 + $0x10] sm:$0xff]  ;;  %v195_v50 = vsel %vm193_vm5, 65535, %v834_v12 }
  0x10   :  { %742 = vmatprep.mubr.msk.bf16.mxu1 %vm186_vm4, %v801_v13  ;;  %v803_v14 = vld [vmem:[%s977_s2 + $0x20] sm:$0xff]   ;;  %v365_v20 = vld [vmem:[%s978_s3 + $0x30] sm:$0xff]  ;;  %v475_v22 = vld [vmem:[%s978_s3 + $0x48] sm:$0xff] }
  0x11   :  { %v252_v15 = vld [vmem:[%s978_s3] sm:$0xff]  ;;  %v255_v23 = vld [vmem:[%s978_s3 + $0x18] sm:$0xff]  ;;  %v476_v25 = vld [vmem:[%s978_s3 + $0x50] sm:$0xff] }
  0x12   :  { %v363_v16 = vld [vmem:[%s978_s3 + $0x20] sm:$0xff]  ;;  %258 = vperm.xlu0 %793, %v252_v15   ;;  %v366_v24 = vld [vmem:[%s978_s3 + $0x38] sm:$0xff]  ;;  %v586_v27 = vld [vmem:[%s978_s3 + $0x68] sm:$0xff] }
  0x13   :  { %717 = vmatmul.mubr.msk.bf16.gmra.mxu0 %vm63_vm3, %v797_v8  ;;  %369 = vperm.xlu1 %794, %v363_v16   ;;  %v474_v21 = vld [vmem:[%s978_s3 + $0x40] sm:$0xff]  ;;  %v477_v28 = vld [vmem:[%s978_s3 + $0x58] sm:$0xff]  ;;  %v587_v29 = vld [vmem:[%s978_s3 + $0x70] sm:$0xff] }
  0x14   :  { %720 = vmatprep.mubr.msk.bf16.mxu0 %vm833_vm2, %v831_v1  ;;  %v585_v26 = vld [vmem:[%s978_s3 + $0x60] sm:$0xff]  ;;  %v588_v30 = vld [vmem:[%s978_s3 + $0x78] sm:$0xff]  ;;  %v802_v4 = vld [vmem:[%s977_s2 + $0x8] sm:$0xff]  }
  0x15   :  { %v623_v32 = vld [vmem:[#allocation2] sm:$0x1]  ;;  %v804_v5 = vld [vmem:[%s977_s2 + $0x28] sm:$0xff]   ;;  %v805_v6 = vld [vmem:[%s977_s2 + $0x10] sm:$0xff]  }
  0x16   :  { %263 = vperm.xlu0 %793, %v253_v17   ;;  %v806_v7 = vld [vmem:[%s977_s2 + $0x18] sm:$0xff]   ;;  %v807_v8 = vld [vmem:[%s977_s2 + $0x30] sm:$0xff]  }
  0x17   :  { %374 = vperm.xlu1 %794, %v364_v18  }
  0x1a   :  { %268 = vperm.xlu0 %793, %v254_v19  }
  0x1b   :  { %721 = vmatmul.mubr.msk.bf16.gmra.mxu0 %vm63_vm3, %v798_v9  ;;  %379 = vperm.xlu1 %794, %v365_v20   ;;  %v808_v9 = vld [vmem:[%s977_s2 + $0x38] sm:$0xff]   ;;  %s835_s2 = smov [#allocation3]  }
  0x1c   :  { %724 = vmatprep.mubr.msk.bf16.mxu0 %vm833_vm2, %v831_v1  ;;  %s641_s23 = sshll.u32 %s835_s2, 4  ;;  %s642_s23 = int_to_ptr.vmem [resolvable:$true] %s641_s23 }
  0x1d   :  { %s809_s4 = scalar_lea.vmem %s642_s23, 16  ;;  %s813_s0 = scalar_lea.vmem %s642_s23, 32 }
  0x1e   :  { %480 = vperm.xlu0 %793, %v474_v21   ;;  %p810_p0 = scmp.ne.s32.totalorder %s642_s23, %s809_s4  ;;  %p814_p1 = scmp.lt.s32.totalorder %s642_s23, %s642_s23 }
  0x1f   :  { %485 = vperm.xlu1 %794, %v475_v22   ;;  %p815_p2 = scmp.lt.s32.totalorder %s813_s0, %s809_s4 }
  0x21   :  { %p816_p3 = por %p815_p2, %p814_p1 }
  0x22   :  { %273 = vperm.xlu0 %793, %v255_v23  }
  0x23   :  { %725 = vmatmul.mubr.msk.bf16.gmra.mxu0 %vm63_vm3, %v799_v10  ;;  %384 = vperm.xlu1 %794, %v366_v24   ;;  %p817_p4 = pnand %p816_p3, %p810_p0 }
  0x24   :  { %728 = vmatprep.mubr.msk.bf16.mxu0 %vm833_vm2, %v831_v1 }
  0x26   :  { %490 = vperm.xlu0 %793, %v476_v25  }
  0x27   :  { %591 = vperm.xlu1 %794, %v585_v26  }
  0x2a   :  { %596 = vperm.xlu0 %793, %v586_v27  }
  0x2b   :  { %729 = vmatmul.mubr.msk.bf16.gmra.mxu0 %vm63_vm3, %v800_v11  ;;  %495 = vperm.xlu1 %794, %v477_v28  }
  0x2c   :  { %770 = vmatprep.mubr.msk.bf16.mxu0 %vm186_vm4, %v803_v14 }
  0x2e   :  { %601 = vperm.xlu0 %793, %v587_v29  }
  0x2f   :  { %606 = vperm.xlu1 %794, %v588_v30  }
  0x32   :  { %626 = vperm.xlu0 %793, %v623_v32  }
  0x8d   :  { %v259_v11 = vpop.permute.xlu0 %258 }
  0x8e   :  { %v370_v10 = vpop.permute.xlu1 %369 }
  0x91   :  { %v264_v14 = vpop.permute.xlu0 %263 }
  0x92   :  { %v375_v12 = vpop.permute.xlu1 %374 }
  0x95   :  { %v269_v18 = vpop.permute.xlu0 %268 }
  0x96   :  { %v380_v15 = vpop.permute.xlu1 %379 }
  0x99   :  { %v481_v24 = vpop.permute.xlu0 %480 }
  0x9a   :  { %v486_v21 = vpop.permute.xlu1 %485 }
  0x9e   :  { %v385_v27 = vpop.permute.xlu1 %384 }
  0xcb   :  { %v120_v31 = vpop.f32.mrf.mxu0 }
  0xcc   :  { %v158_v2 = vmax.f32 %v120_v31, 0.0 }
  0xcd   :  { %v714_v33 = vpop.f32.mrf.mxu0 }
  0xcf   :  { %v123_v34 = vpop.f32.mrf.mxu0 }
  0xd0   :  { %v159_v0 = vmax.f32 %v123_v34, 0.0  ;;  %v274_v34 = vpop.permute.xlu0 %273 }
  0xd1   :  { %v715_v35 = vpop.f32.mrf.mxu0 }
  0xd2   :  { %v167_v3 = vpack.c.bf16 %v159_v0, %v158_v2 }
  0xd3   :  { %v128_v36 = vpop.f32.mrf.mxu0 }
  0xd4   :  { %v160_v63 = vmax.f32 %v128_v36, 0.0 }
  0xd5   :  { %v718_v37 = vpop.f32.mrf.mxu0 }
  0xd7   :  { %v131_v38 = vpop.f32.mrf.mxu0 }
  0xd8   :  { %v161_v61 = vmax.f32 %v131_v38, 0.0 }
  0xd9   :  { %v719_v39 = vpop.f32.mrf.mxu0 }
  0xda   :  { %v168_v1 = vpack.c.bf16 %v161_v61, %v160_v63 }
  0xdb   :  { %v136_v40 = vpop.f32.mrf.mxu0 }
  0xdc   :  { %v162_v60 = vmax.f32 %v136_v40, 0.0  ;;  %v592_v40 = vpop.permute.xlu1 %591 }
  0xdd   :  { %v722_v41 = vpop.f32.mrf.mxu0 }
  0xdf   :  { %v139_v42 = vpop.f32.mrf.mxu0 }
  0xe0   :  { %v163_v58 = vmax.f32 %v139_v42, 0.0 }
  0xe1   :  { %v723_v43 = vpop.f32.mrf.mxu0 }
  0xe2   :  { %v169_v62 = vpack.c.bf16 %v163_v58, %v162_v60 }
  0xe3   :  { %v144_v44 = vpop.f32.mrf.mxu0 }
  0xe4   :  { %v164_v55 = vmax.f32 %v144_v44, 0.0 }
  0xe5   :  { %v726_v45 = vpop.f32.mrf.mxu0 }
  0xe7   :  { %v147_v46 = vpop.f32.mrf.mxu0 }
  0xe8   :  { %v165_v52 = vmax.f32 %v147_v46, 0.0 }
  0xe9   :  { %v727_v47 = vpop.f32.mrf.mxu0 }
  0xea   :  { %v170_v59 = vpack.c.bf16 %v165_v52, %v164_v55  ;;  %v491_v52 = vpop.permute.xlu0 %490 }
  0xeb   :  { %v152_v48 = vpop.f32.mrf.mxu0 }
  0xec   :  { %v166_v49 = vmax.f32 %v152_v48, 0.0 }
  0xed   :  { %v730_v51 = vpop.f32.mrf.mxu0 }
  0xee   :  { %v171_v53 = vpack.c.bf16 %v166_v49, %v166_v49 }
  0xef   :  { %v155_v54 = vpop.f32.mrf.mxu0 }
  0xf0   :  { %v197_v56 = vand.u32 %v195_v50, %v171_v53 }
  0xf1   :  { %v731_v57 = vpop.f32.mrf.mxu0 }
  0xf2   :  { %732 = vmatprep.subr.bf16.mxu1 %v197_v56  ;;  %760 = vmatprep.subr.bf16.mxu0 %v197_v56 }
  0xf3   :  { %733 = vmatpush3.bf16.msra.mxu1 %v197_v56  ;;  %761 = vmatpush3.bf16.msra.mxu0 %v197_v56 }
  0xf4   :  { %734 = vmatprep.subr.bf16.mxu1 %v170_v59  ;;  %762 = vmatprep.subr.bf16.mxu0 %v170_v59 }
  0xf7   :  { %735 = vmatpush3.bf16.msra.mxu1 %v170_v59  ;;  %763 = vmatpush3.bf16.msra.mxu0 %v170_v59 }
  0xf8   :  { %736 = vmatprep.subr.bf16.mxu1 %v169_v62  ;;  %764 = vmatprep.subr.bf16.mxu0 %v169_v62 }
  0xfb   :  { %737 = vmatpush3.bf16.msra.mxu1 %v169_v62  ;;  %765 = vmatpush3.bf16.msra.mxu0 %v169_v62 }
  0xfc   :  { %738 = vmatprep.subr.bf16.mxu1 %v168_v1  ;;  %766 = vmatprep.subr.bf16.mxu0 %v168_v1 }
  0xff   :  { %739 = vmatpush3.bf16.msra.mxu1 %v168_v1  ;;  %767 = vmatpush3.bf16.msra.mxu0 %v168_v1 }
 0x100   :  { %740 = vmatprep.subr.bf16.mxu1 %v167_v3  ;;  %768 = vmatprep.subr.bf16.mxu0 %v167_v3 }
 0x103   :  { %741 = vmatpush3.bf16.msra.mxu1 %v167_v3  ;;  %769 = vmatpush3.bf16.msra.mxu0 %v167_v3 }
 0x104   :  { %746 = vmatprep.subr.bf16.mxu1 %v197_v56 }
 0x106   :  { %743 = vmatmul.mubr.msk.bf16.vlgmr.msra.gmra.mxu1 %vm186_vm4, %v802_v4  ;;  %771 = vmatmul.mubr.msk.bf16.vlgmr.msra.gmra.mxu0 %vm186_vm4, %v804_v5 }
 0x107   :  { %747 = vmatpush3.bf16.msra.mxu1 %v197_v56  ;;  %756 = vmatprep.mubr.msk.bf16.mxu1 %vm186_vm4, %v805_v6 }
 0x108   :  { %748 = vmatprep.subr.bf16.mxu1 %v170_v59 }
 0x10b   :  { %749 = vmatpush3.bf16.msra.mxu1 %v170_v59 }
 0x10c   :  { %750 = vmatprep.subr.bf16.mxu1 %v169_v62 }
 0x10f   :  { %751 = vmatpush3.bf16.msra.mxu1 %v169_v62 }
 0x110   :  { %752 = vmatprep.subr.bf16.mxu1 %v168_v1 }
 0x113   :  { %753 = vmatpush3.bf16.msra.mxu1 %v168_v1 }
 0x114   :  { %754 = vmatprep.subr.bf16.mxu1 %v167_v3 }
 0x117   :  { %755 = vmatpush3.bf16.msra.mxu1 %v167_v3 }
 0x118   :  { %774 = vmatprep.subr.bf16.mxu1 %v197_v56 }
 0x11a   :  { %757 = vmatmul.mubr.msk.bf16.vlgmr.msra.gmra.mxu1 %vm186_vm4, %v806_v7 }
 0x11b   :  { %775 = vmatpush3.bf16.msra.mxu1 %v197_v56  ;;  %784 = vmatprep.mubr.msk.bf16.mxu1 %vm186_vm4, %v807_v8 }
 0x11c   :  { %776 = vmatprep.subr.bf16.mxu1 %v170_v59 }
 0x11f   :  { %777 = vmatpush3.bf16.msra.mxu1 %v170_v59  ;;  %v496_v59 = vpop.permute.xlu1 %495 }
 0x120   :  { %778 = vmatprep.subr.bf16.mxu1 %v169_v62 }
 0x123   :  { %779 = vmatpush3.bf16.msra.mxu1 %v169_v62 }
 0x124   :  { %780 = vmatprep.subr.bf16.mxu1 %v168_v1 }
 0x127   :  { %781 = vmatpush3.bf16.msra.mxu1 %v168_v1 }
 0x128   :  { %782 = vmatprep.subr.bf16.mxu1 %v167_v3 }
 0x12b   :  { %783 = vmatpush3.bf16.msra.mxu1 %v167_v3 }
 0x12e   :  { %785 = vmatmul.mubr.msk.bf16.vlgmr.msra.gmra.mxu1 %vm186_vm4, %v808_v9  ;;  %v597_v9 = vpop.permute.xlu0 %596 }
 0x1c6   :  { %v744_v13 = vpop.f32.mrf.mxu1  ;;  %v772_v16 = vpop.f32.mrf.mxu0 }
 0x1c7   :  { %v250_v38 = vmax.f32 %v744_v13, 0.0  ;;  %v472_v43 = vmax.f32 %v772_v16, 0.0 }
 0x1c8   :  { %v233_v17 = vpop.f32.mrf.mxu1  ;;  %v455_v19 = vpop.f32.mrf.mxu0 }
 0x1c9   :  { %v248_v30 = vmax.f32 %v233_v17, 0.0  ;;  %v470_v31 = vmax.f32 %v455_v19, 0.0  ;;  %v278_v50 = vmul.f32 %v269_v18, %v250_v38  ;;  %v500_v55 = vmul.f32 %v491_v52, %v472_v43 }
 0x1ca   :  { %v745_v20 = vpop.f32.mrf.mxu1  ;;  %v773_v22 = vpop.f32.mrf.mxu0 }
 0x1cb   :  { %v276_v39 = vmul.f32 %v259_v11, %v248_v30  ;;  %v498_v44 = vmul.f32 %v481_v24, %v470_v31  ;;  %v251_v51 = vmax.f32 %v745_v20, 0.0  ;;  %v473_v56 = vmax.f32 %v773_v22, 0.0 }
 0x1cc   :  { %v236_v23 = vpop.f32.mrf.mxu1  ;;  %v458_v28 = vpop.f32.mrf.mxu0 }
 0x1cd   :  { %v249_v26 = vmax.f32 %v236_v23, 0.0  ;;  %v471_v32 = vmax.f32 %v458_v28, 0.0  ;;  %v279_v62 = vmul.f32 %v274_v34, %v251_v51  ;;  %v501_v0 = vmul.f32 %v496_v59, %v473_v56  ;;  %v602_v23 = vpop.permute.xlu0 %601 }
 0x1cf   :  { %v277_v35 = vmul.f32 %v264_v14, %v249_v26  ;;  %v499_v45 = vmul.f32 %v486_v21, %v471_v32 }
 0x1d1   :  { %v280_v46 = vadd.f32 %v277_v35, %v276_v39  ;;  %v502_v57 = vadd.f32 %v499_v45, %v498_v44  ;;  %v629_v35 = vlaneseq }
 0x1d3   :  { %v281_v58 = vadd.f32 %v280_v46, %v278_v50  ;;  %v503_v1 = vadd.f32 %v502_v57, %v500_v55 }
 0x1d5   :  { %v282_v2 = vadd.f32 %v281_v58, %v279_v62  ;;  %v504_v4 = vadd.f32 %v503_v1, %v501_v0 }
 0x1d7   :  { %v283_v6 = vrot.slane %v282_v2, 4 }
 0x1da   :  { %v758_v25 = vpop.f32.mrf.mxu1 }
 0x1db   :  { %v361_v41 = vmax.f32 %v758_v25, 0.0 }
 0x1dc   :  { %v344_v29 = vpop.f32.mrf.mxu1 }
 0x1dd   :  { %v359_v36 = vmax.f32 %v344_v29, 0.0  ;;  %v389_v53 = vmul.f32 %v380_v15, %v361_v41  ;;  %v630_v41 = vshrl.u32 %v629_v35, 7 }
 0x1de   :  { %v759_v33 = vpop.f32.mrf.mxu1 }
 0x1df   :  { %v387_v47 = vmul.f32 %v370_v10, %v359_v36  ;;  %v362_v48 = vmax.f32 %v759_v33, 0.0  ;;  %v505_v10 = vrot.slane %v504_v4, 4  ;;  %v631_v46 = vsub.s32 0, %v630_v41 }
 0x1e0   :  { %v347_v37 = vpop.f32.mrf.mxu1 }
 0x1e1   :  { %v360_v42 = vmax.f32 %v347_v37, 0.0  ;;  %v390_v60 = vmul.f32 %v385_v27, %v362_v48  ;;  %v506_v18 = vadd.f32 %v505_v10, %v504_v4  ;;  %v607_v27 = vpop.permute.xlu1 %606 }
 0x1e3   :  { %v388_v49 = vmul.f32 %v375_v12, %v360_v42  ;;  %v284_v12 = vadd.f32 %v283_v6, %v282_v2  ;;  %v507_v28 = vrot.slane %v506_v18, 2 }
 0x1e5   :  { %v391_v54 = vadd.f32 %v388_v49, %v387_v47  ;;  %v285_v19 = vrot.slane %v284_v12, 2  ;;  %v508_v34 = vadd.f32 %v507_v28, %v506_v18  ;;  %v627_v49 = vpop.permute.xlu0 %626 }
 0x1e6   :  { %v632_v52 = vrot.slane %v627_v49, %v631_v46 }
 0x1e7   :  { %v392_v61 = vadd.f32 %v391_v54, %v389_v53  ;;  %v286_v31 = vadd.f32 %v285_v19, %v284_v12 }
 0x1e9   :  { %v393_v63 = vadd.f32 %v392_v61, %v390_v60  ;;  %v287_v37 = vrot.slane %v286_v31, 1 }
 0x1eb   :  { %v394_v3 = vrot.slane %v393_v63, 4  ;;  %v288_v42 = vadd.f32 %v287_v37, %v286_v31 }
 0x1ed   :  { %v395_v8 = vadd.f32 %v394_v3, %v393_v63 }
 0x1ee   :  { %v786_v5 = vpop.f32.mrf.mxu1 }
 0x1ef   :  { %v396_v15 = vrot.slane %v395_v8, 2  ;;  %v583_v16 = vmax.f32 %v786_v5, 0.0 }
 0x1f0   :  { %v566_v7 = vpop.f32.mrf.mxu1 }
 0x1f1   :  { %v581_v13 = vmax.f32 %v566_v7, 0.0  ;;  %v611_v24 = vmul.f32 %v602_v23, %v583_v16  ;;  %v397_v26 = vadd.f32 %v396_v15, %v395_v8 }
 0x1f2   :  { %v787_v11 = vpop.f32.mrf.mxu1 }
 0x1f3   :  { %v609_v20 = vmul.f32 %v592_v40, %v581_v13  ;;  %v584_v21 = vmax.f32 %v787_v11, 0.0  ;;  %v398_v33 = vrot.slane %v397_v26, 1  ;;  %v509_v40 = vrot.slane %v508_v34, 1 }
 0x1f4   :  { %v569_v14 = vpop.f32.mrf.mxu1 }
 0x1f5   :  { %v582_v17 = vmax.f32 %v569_v14, 0.0  ;;  %v612_v29 = vmul.f32 %v607_v27, %v584_v21  ;;  %v399_v39 = vadd.f32 %v398_v33, %v397_v26  ;;  %v510_v47 = vadd.f32 %v509_v40, %v508_v34 }
 0x1f7   :  { %v610_v22 = vmul.f32 %v597_v9, %v582_v17  ;;  %v400_v44 = vadd.f32 %v399_v39, %v288_v42 }
 0x1f9   :  { %v613_v25 = vadd.f32 %v610_v22, %v609_v20  ;;  %v511_v50 = vadd.f32 %v510_v47, %v400_v44 }
 0x1fb   :  { %v614_v30 = vadd.f32 %v613_v25, %v611_v24 }
 0x1fd   :  { %v615_v32 = vadd.f32 %v614_v30, %v612_v29 }
 0x1ff   :  { %v616_v36 = vrot.slane %v615_v32, 4 }
 0x201   :  { %v617_v38 = vadd.f32 %v616_v36, %v615_v32 }
 0x203   :  { %v618_v43 = vrot.slane %v617_v38, 2 }
 0x205   :  { %v619_v45 = vadd.f32 %v618_v43, %v617_v38 }
 0x207   :  { %v620_v48 = vrot.slane %v619_v45, 1 }
 0x209   :  { %v621_v51 = vadd.f32 %v620_v48, %v619_v45 }
 0x20b   :  { %v622_v53 = vadd.f32 %v621_v51, %v511_v50 }
 0x20d   :  { %v633_v54 = vadd.f32 %v632_v52, %v622_v53 }
 0x20f   :  { %634 = vst [vmem:[#allocation3] sm:$0x1] %v633_v54 }
 0x210   :  { %820 = shalt.err (!%p817_p4)
}
 0x211   :  { %644 = dma.vmem_to_hbm [thread:$0]  %s642_s23, 16, %s980_s5, [#allocation4]  }
 0x212   :  { %829 = dma.done.wait [#allocation4], 16  }
 0x213   :  { %830 = vsyncadd [#allocation4], 4294967280 }
 0x214   :  { %648 = vsyncpa [#allocation4], 1 }

</bundles_post_ra>
